<compile_context>
chip_gen: v7x
topology: tpu7x:2x2x1
jax: 0.10.0
libtpu: 0.0.40
codegen_flags: <defaults>
</compile_context>

<pallas_src>
import jax
import jax.numpy as jnp
from jax import lax
from jax.experimental import pallas as pl
from jax.experimental.pallas import tpu as pltpu

_VMEM_LIMIT = 48 * 1024 * 1024   # fits under v7x's 64 MiB/TC with compiler headroom


# ------------------------------ linear: y = x @ W.T ------------------------------

def _linear_kernel(x_ref, wt_ref, o_ref):
    o_ref[...] = jnp.dot(x_ref[...], wt_ref[...],
                         preferred_element_type=jnp.float32).astype(o_ref.dtype)


def linear_pallas(x, weight, *, out_dtype=jnp.float32, mxu_bf16=True, row_tile=512):
    """x: (n, in_c), weight: (out_c, in_c) -> (n, out_c) in out_dtype."""
    n, in_c = x.shape
    out_c = weight.shape[0]
    cdt = jnp.bfloat16 if mxu_bf16 else jnp.float32
    xc = x.astype(cdt)
    wt = weight.T.astype(cdt)                         # (in_c, out_c)
    blk_m = min(row_tile, ((n + 7) // 8) * 8)         # ragged tail handled by Pallas masking
    return pl.pallas_call(
        _linear_kernel,
        out_shape=jax.ShapeDtypeStruct((n, out_c), out_dtype),
        grid_spec=pltpu.PrefetchScalarGridSpec(
            num_scalar_prefetch=0,
            grid=(pl.cdiv(n, blk_m),),
            in_specs=[pl.BlockSpec((blk_m, in_c), lambda i: (i, 0)),
                      pl.BlockSpec((in_c, out_c), lambda i: (0, 0))],
            out_specs=pl.BlockSpec((blk_m, out_c), lambda i: (i, 0))),
        compiler_params=pltpu.CompilerParams(
            dimension_semantics=("parallel",),
            vmem_limit_bytes=_VMEM_LIMIT),
    )(xc, wt)


# ------------- CSR aggregation (+ optional fused weight), HBM-resident features -------------

def _make_agg_kernel(*, normalize, dst_blk, edge_blk, fuse_weight, feat_dtype):
    def kernel(*refs):
        if fuse_weight:
            (ptr_ref, lo_ref, hi_ref, idx_hbm, feat_hbm, wt_ref, out_ref,
             idx_sm, stage, acc, idx_sem, row_sem) = refs
        else:
            (ptr_ref, lo_ref, hi_ref, idx_hbm, feat_hbm, out_ref,
             idx_sm, stage, acc, idx_sem, row_sem) = refs
            wt_ref = None

        base = pl.program_id(0) * dst_blk
        row_start = ptr_ref[base]                     # first edge of this dst block
        row_end = ptr_ref[base + dst_blk]             # one past the last edge
        n_edges = idx_hbm.shape[0]                    # static; >= edge_blk by construction
        nwin = (row_end - row_start + edge_blk - 1) // edge_blk

        lo = lo_ref[...]                              # (dst_blk, 1) segment starts
        hi = hi_ref[...]                              # (dst_blk, 1) segment ends

        acc[...] = jnp.zeros_like(acc)

        def win_off(w):
            off = row_start + w * edge_blk
            off_c = jnp.maximum(jnp.minimum(off, n_edges - edge_blk), 0)  # clamp HBM window
            return off, off_c

        def idx_copy(slot, off_c):
            return pltpu.make_async_copy(idx_hbm.at[pl.ds(off_c, edge_blk)],
                                         idx_sm.at[slot], idx_sem.at[slot])

        def issue_rows(slot):
            # edge_blk independent row-gather DMAs: HBM features -> VMEM staging tile
            for k in range(edge_blk):
                j = idx_sm[slot, k]
                pltpu.make_async_copy(feat_hbm.at[pl.ds(j, 1)],
                                      stage.at[slot, pl.ds(k, 1)],
                                      row_sem.at[slot]).start()

        def wait_rows(slot):
            for k in range(edge_blk):
                pltpu.make_async_copy(feat_hbm.at[pl.ds(0, 1)],
                                      stage.at[slot, pl.ds(k, 1)],
                                      row_sem.at[slot]).wait()

        # ---- prologue: idx window 0 (sync), gather window 0, prefetch idx window 1 ----
        @pl.when(nwin > 0)
        def _():
            cp = idx_copy(0, win_off(0)[1])
            cp.start()
            cp.wait()
            issue_rows(0)

            @pl.when(nwin > 1)
            def _():
                idx_copy(1, win_off(1)[1]).start()

        # ---- pipelined edge-window loop: gather w+1 while reducing w ----
        def body(w, carry):
            s = w % 2

            @pl.when(w + 1 < nwin)
            def _():
                ns = 1 - s
                idx_copy(ns, win_off(w + 1)[1]).wait()
                issue_rows(ns)

                @pl.when(w + 2 < nwin)
                def _():
                    idx_copy(s, win_off(w + 2)[1]).start()

            wait_rows(s)

            # block segment matmul on the MXU: S (dst_blk, edge_blk) @ rows (edge_blk, C)
            off, off_c = win_off(w)
            pos = off_c + lax.broadcasted_iota(jnp.int32, (1, edge_blk), 1)
            sel = (pos >= lo) & (pos < hi) & (pos >= off)   # p >= off: no double count on clamp
            acc[...] += jnp.dot(sel.astype(feat_dtype), stage[s],
                                preferred_element_type=jnp.float32)
            return carry

        lax.fori_loop(0, nwin, body, 0)

        res = acc[...]
        if normalize:
            deg = (hi - lo).astype(jnp.float32)
            inv = jnp.where(deg > 0.0,
                            pl.reciprocal(jnp.maximum(deg, 1.0), approx=True),
                            0.0)
            res = res * inv
        if fuse_weight:
            res = jnp.dot(res.astype(feat_dtype), wt_ref[...],
                          preferred_element_type=jnp.float32)
        out_ref[...] = res.astype(out_ref.dtype)

    return kernel


def _gcn_aggregate(feat, ptr, idx, num_dst, *, weight=None, normalize=True,
                   mxu_bf16=True, dst_blk=128, edge_blk=128, out_dtype=jnp.float32):
    """out[d] = w_d * sum_{e in segment(d)} feat[idx[e]]  (w_d = 1/deg or 1),
       optionally followed by a fused @ weight.T."""
    n_src, c_feat = feat.shape
    feat_c = feat.astype(jnp.bfloat16 if mxu_bf16 else jnp.float32)

    ptr = ptr.astype(jnp.int32)
    idx = idx.astype(jnp.int32)
    n_edges = int(idx.shape[0])
    if n_edges < edge_blk:                            # guarantee one full DMA window exists
        idx = jnp.concatenate([idx, jnp.zeros((edge_blk - n_edges,), jnp.int32)])

    nblk = pl.cdiv(num_dst, dst_blk)
    num_dst_pad = nblk * dst_blk
    last = ptr[num_dst]
    ptr_pad = jnp.full((num_dst_pad + 1,), last, jnp.int32).at[:num_dst + 1].set(
        ptr[:num_dst + 1])                            # padded destinations have degree 0
    lo = ptr_pad[:num_dst_pad].reshape(num_dst_pad, 1)
    hi = ptr_pad[1:].reshape(num_dst_pad, 1)

    fuse = weight is not None
    c_out = weight.shape[0] if fuse else c_feat

    args = [ptr_pad, lo, hi, idx, feat_c]
    in_specs = [
        pl.BlockSpec((dst_blk, 1), lambda b, p: (b, 0)),       # per-block segment starts
        pl.BlockSpec((dst_blk, 1), lambda b, p: (b, 0)),       # per-block segment ends
        pl.BlockSpec(memory_space=pl.ANY),                     # idx: HBM, windowed DMA
        pl.BlockSpec(memory_space=pl.ANY),                     # features: HBM, row gather DMA
    ]
    if fuse:
        args.append(weight.T.astype(feat_c.dtype))             # (c_feat, c_out) resident
        in_specs.append(pl.BlockSpec((c_feat, c_out), lambda b, p: (0, 0)))

    kernel = _make_agg_kernel(normalize=normalize, dst_blk=dst_blk, edge_blk=edge_blk,
                              fuse_weight=fuse, feat_dtype=feat_c.dtype)
    return pl.pallas_call(
        kernel,
        out_shape=jax.ShapeDtypeStruct((num_dst, c_out), out_dtype),
        grid_spec=pltpu.PrefetchScalarGridSpec(
            num_scalar_prefetch=1,
            grid=(nblk,),
            in_specs=in_specs,
            out_specs=pl.BlockSpec((dst_blk, c_out), lambda b, p: (b, 0)),
            scratch_shapes=[
                pltpu.SMEM((2, edge_blk), jnp.int32),           # double-buffered idx windows
                pltpu.VMEM((2, edge_blk, c_feat), feat_c.dtype),  # double-buffered row stage
                pltpu.VMEM((dst_blk, c_feat), jnp.float32),     # f32 accumulator
                pltpu.SemaphoreType.DMA((2,)),                  # idx window sems
                pltpu.SemaphoreType.DMA((2,)),                  # row gather sems
            ]),
        compiler_params=pltpu.CompilerParams(
            dimension_semantics=("parallel",),
            vmem_limit_bytes=_VMEM_LIMIT),
    )(*args)


# ------------------------------ MyGCNConv.forward ------------------------------

def gcn_conv_forward(x, weight, ptr, idx, num_dst, *, normalize=True, mxu_bf16=True,
                     dst_blk=128, edge_blk=128, row_tile=512):
    """MyGCNConv.forward (bias=False, the module default).  weight: (out_c, in_c)."""
    in_c = x.shape[1]
    out_c = weight.shape[0]
    mm_before = in_c > out_c
    if mm_before:
        # transform first (bf16 intermediate halves the gather traffic), then aggregate
        h = linear_pallas(x, weight,
                          out_dtype=jnp.bfloat16 if mxu_bf16 else jnp.float32,
                          mxu_bf16=mxu_bf16, row_tile=row_tile)
        out = _gcn_aggregate(h, ptr, idx, num_dst, weight=None, normalize=normalize,
                             mxu_bf16=mxu_bf16, dst_blk=dst_blk, edge_blk=edge_blk)
    else:
        # aggregate first with the weight matmul fused into the same kernel
        out = _gcn_aggregate(x, ptr, idx, num_dst, weight=weight, normalize=normalize,
                             mxu_bf16=mxu_bf16, dst_blk=dst_blk, edge_blk=edge_blk)
    return out


if __name__ == "__main__":
    key = jax.random.PRNGKey(0)
    k1, k2, k3, k4 = jax.random.split(key, 4)

    num_src, num_dst = 20, 10
    degs = [3, 0, 5, 1, 19, 2, 9, 4, 0, 7]       # isolated nodes + deg > test edge block
    ptr_list = [0]
    for d in degs:
        ptr_list.append(ptr_list[-1] + d)
    num_edge = ptr_list[-1]                       # 50
    ptr = jnp.asarray(ptr_list, jnp.int32)
    idx = jax.random.randint(k1, (num_edge,), 0, num_src, dtype=jnp.int32)
    seg = jnp.asarray([i for i, d in enumerate(degs) for _ in range(d)], jnp.int32)
    deg_f = jnp.asarray(degs, jnp.float32)

    def seg_mean(rows):
        s = jax.ops.segment_sum(rows, seg, num_segments=num_dst)
        return jnp.where(deg_f[:, None] > 0, s / jnp.maximum(deg_f, 1.0)[:, None], 0.0)

    # case 1: in_c > out_c (transform -> normalized aggregation); small blocks exercise
    # the multi-window / multi-block pipeline and the clamped final edge window.
    in_c, out_c = 32, 16
    w1 = jax.random.normal(k2, (out_c, in_c), jnp.float32) * (2.0 / (in_c + out_c)) ** 0.5
    x1 = jax.random.normal(k3, (num_src, in_c), jnp.float32)
    out1 = jax.block_until_ready(
        gcn_conv_forward(x1, w1, ptr, idx, num_dst, dst_blk=8, edge_blk=8))
    ref1 = seg_mean((x1 @ w1.T)[idx])
    assert out1.shape == (num_dst, out_c)
    assert jnp.allclose(out1, ref1, atol=3e-2, rtol=3e-2), float(jnp.max(jnp.abs(out1 - ref1)))

    # case 2: in_c <= out_c (normalized aggregation with fused transform)
    in_c2, out_c2 = 16, 32
    w2 = jax.random.normal(k4, (out_c2, in_c2), jnp.float32) * (2.0 / (in_c2 + out_c2)) ** 0.5
    x2 = x1[:, :in_c2]
    out2 = jax.block_until_ready(
        gcn_conv_forward(x2, w2, ptr, idx, num_dst, dst_blk=8, edge_blk=8))
    ref2 = seg_mean(x2[idx]) @ w2.T
    assert jnp.allclose(out2, ref2, atol=3e-2, rtol=3e-2), float(jnp.max(jnp.abs(out2 - ref2)))

    # case 3: normalize=False (AggrOP plain-sum path) with production block sizes
    out3 = jax.block_until_ready(
        gcn_conv_forward(x1, w1, ptr, idx, num_dst, normalize=False))
    ref3 = jax.ops.segment_sum((x1 @ w1.T)[idx], seg, num_segments=num_dst)
    assert jnp.allclose(out3, ref3, atol=3e-2, rtol=3e-2), float(jnp.max(jnp.abs(out3 - ref3)))

    print("KERNEL_OK")
</pallas_src>

<mosaic_0001>
module attributes {stable_mosaic.version = 11 : i64} {
  func.func @_linear_kernel(%arg0: i32, %arg1: memref<24x32xbf16, #tpu.memory_space<vmem>>, %arg2: memref<32x16xbf16, #tpu.memory_space<vmem>>, %arg3: memref<24x16xbf16, #tpu.memory_space<vmem>>) attributes {dimension_semantics = [#tpu.dimension_semantics<parallel>], iteration_bounds = array<i64: 1>, scalar_prefetch = 0 : i64, scratch_operands = 0 : i64, tpu.core_type = #tpu.core_type<tc>, window_params = [{transform_indices = @transform_0, window_bounds = array<i64: 24, 32>}, {pipeline_mode = #tpu.pipeline_mode<synchronous>, transform_indices = @transform_1, window_bounds = array<i64: 32, 16>}, {transform_indices = @transform_2, window_bounds = array<i64: 24, 16>}]} {
    %c0 = arith.constant 0 : index
    %c0_0 = arith.constant 0 : index
    %0 = vector.load %arg1[%c0, %c0_0] : memref<24x32xbf16, #tpu.memory_space<vmem>>, vector<24x32xbf16>
    %c0_1 = arith.constant 0 : index
    %c0_2 = arith.constant 0 : index
    %1 = vector.load %arg2[%c0_1, %c0_2] : memref<32x16xbf16, #tpu.memory_space<vmem>>, vector<32x16xbf16>
    %cst = arith.constant dense<0.000000e+00> : vector<24x16xf32>
    %2 = tpu.matmul %0, %1, %cst {dimension_numbers = #tpu.dot_dimension_numbers<[1], [0], [0], [1], [0, 0, 1, 1], [], []>} : vector<24x32xbf16>, vector<32x16xbf16>, vector<24x16xf32> -> vector<24x16xf32>
    %3 = arith.truncf %2 : vector<24x16xf32> to vector<24x16xbf16>
    %c0_3 = arith.constant 0 : index
    %c0_4 = arith.constant 0 : index
    %4 = vector.load %arg3[%c0_3, %c0_4] : memref<24x16xbf16, #tpu.memory_space<vmem>>, vector<24x16xbf16>
    tpu.vector_store %arg3[%c0_3, %c0_4], %3 {strides = array<i32>} : memref<24x16xbf16, #tpu.memory_space<vmem>>, vector<24x16xbf16>,
    return
  }
  func.func @transform_0(%arg0: i32) -> (i32, i32) {
    %c0_i32 = arith.constant 0 : i32
    %c0_i32_0 = arith.constant 0 : i32
    return %arg0, %c0_i32 : i32, i32
  }
  func.func @transform_1(%arg0: i32) -> (i32, i32) {
    %c0_i32 = arith.constant 0 : i32
    %c0_i32_0 = arith.constant 0 : i32
    %c0_i32_1 = arith.constant 0 : i32
    return %c0_i32, %c0_i32_0 : i32, i32
  }
  func.func @transform_2(%arg0: i32) -> (i32, i32) {
    %c0_i32 = arith.constant 0 : i32
    %c0_i32_0 = arith.constant 0 : i32
    return %arg0, %c0_i32 : i32, i32
  }
}

</mosaic_0001>

<bundles_post_ra>
// kernel: tpu_custom_call.1
= control target key start
LH: loop header
LB: loop body
LE: loop exit
PB: predicated region body
PF: predicated region fallthrough
CT: control target
= control target key end

     0   :  { %vm39_vm0 = vcmask 261120   ;;  %vm107_vm1 = vcmask 125952   ;;  %s179_s1 = inlined_call_operand.vmem [shape: bf16[32,16], index: 1, kind: input, shape index: {}]   ;;  %s180_s0 = inlined_call_operand.vmem [shape: bf16[20,32], index: 0, kind: input, shape index: {}]   ;;  %s181_s2 = inlined_call_operand.vmem [shape: bf16[20,16], index: 2, kind: output, shape index: {}]  }
   0x1   :  { %v139_v0 = vld [vmem:[%s179_s1] sm:$0xff]   ;;  %v140_v1 = vld [vmem:[%s179_s1 + $0x8] sm:$0xff]  }
   0x2   :  { %131 = vmatprep.subr.bf16.mxu0 %v139_v0  ;;  %v141_v2 = vld [vmem:[%s180_s0] sm:$0xff]   ;;  %v142_v3 = vld [vmem:[%s180_s0 + $0x8] ss:$0 sps:$4 sm:$0xff]  }
   0x3   :  { %132 = vmatpush3.bf16.msra.mxu0 %v139_v0  ;;  %135 = vmatprep.mubr.msk.bf16.mxu0 %vm39_vm0, %v141_v2 }
   0x4   :  { %133 = vmatprep.subr.bf16.mxu0 %v140_v1 }
   0x7   :  { %134 = vmatpush3.bf16.msra.mxu0 %v140_v1 }
   0xa   :  { %136 = vmatmul.mubr.msk.bf16.vlgmr.msra.gmra.mrb[0].mxu0 %vm39_vm0, %v142_v3 }
  0xdd   :  { %v137_v4 = vpop.f32.mrb[0].mxu0 }
  0xde   :  { %v126_v5 = vpack.c.bf16 %v137_v4, %v137_v4  ;;  %v80_v6 = vpop.f32.mrb[1].mxu0 }
  0xdf   :  { %v124_v7 = vpack.c.bf16 %v80_v6, %v80_v6  ;;  %v138_v8 = vpop.f32.mrb[2].mxu0 }
  0xe0   :  { %110 = vst.msk [vmem:[%s181_s2 + $0x8] sm:$0xf] %vm107_vm1, %v126_v5  ;;  %v83_v9 = vpop.f32.mrb[3].mxu0 }
  0xe1   :  { %108 = vst.msk [vmem:[%s181_s2] sm:$0xf] %vm107_vm1, %v124_v7  ;;  %v125_v10 = vpack.c.bf16 %v83_v9, %v83_v9 }
  0xe3   :  { %109 = vst.msk [vmem:[%s181_s2 + $0x4] sm:$0xf] %vm107_vm1, %v125_v10 }

</bundles_post_ra>
